<compile_context>
chip_gen: v7x
topology: tpu7x:2x2x1
jax: 0.10.0
libtpu: 0.0.40
codegen_flags: <defaults>
</compile_context>

<pallas_src>
import functools

import jax
import jax.numpy as jnp
from jax.experimental import pallas as pl
from jax.experimental.pallas import tpu as pltpu

LOG_STD_MAX = 2.0
LOG_STD_MIN = -5.0
_LOG_STD_MID = 0.5 * (LOG_STD_MAX + LOG_STD_MIN)          # C0
_LOG_STD_HALF_RANGE = 0.5 * (LOG_STD_MAX - LOG_STD_MIN)   # C1


def _round_up(n, m):
    return ((n + m - 1) // m) * m


def actor_kernel(x_ref, w1_ref, b1_ref, w2_ref, b2_ref, wh_ref, bh_ref,
                 mask_ref, out_ref):
    """One batch tile of the 3-matmul MLP; heads fused into a single slab.

    MXU operands use the weight dtype (bf16 by default); accumulation is f32.
    """
    cdt = w1_ref.dtype  # compute dtype for MXU operands (bf16 or f32)

    # fc1 + ReLU
    x = x_ref[...].astype(cdt)
    h1 = jnp.dot(x, w1_ref[...], preferred_element_type=jnp.float32) + b1_ref[...]
    h1 = jnp.maximum(h1, 0.0)

    # fc2 + ReLU
    h2 = jnp.dot(h1.astype(cdt), w2_ref[...],
                 preferred_element_type=jnp.float32) + b2_ref[...]
    h2 = jnp.maximum(h2, 0.0)

    # fused heads: lanes [0, act_dim) -> mean, [act_dim, 2*act_dim) -> log_std,
    # remaining lanes are zero padding (sliced off in the wrapper).
    z = jnp.dot(h2.astype(cdt), wh_ref[...],
                preferred_element_type=jnp.float32) + bh_ref[...]

    # log_std squash: C0 + C1 * tanh(z)  (tanh on the EUP slot).
    squashed = _LOG_STD_MID + _LOG_STD_HALF_RANGE * jnp.tanh(z)

    # mask is a resident (1, head_n) 0/1 f32 constant: 1 on log_std lanes.
    out_ref[...] = z + mask_ref[...] * (squashed - z)


def pack_actor_params(params, compute_dtype=jnp.bfloat16):
    """Build the kernel-ready parameter dict (fused, lane-padded heads).

    Done ONCE outside the hot path.  Weights are stored in `compute_dtype`
    (bf16 by default -> ~2-4x MXU throughput, half the resident-weight DMA);
    biases and the lane mask stay f32.
    """
    wm, bm = params["wm"], params["bm"]
    ws, bs = params["ws"], params["bs"]
    act_dim = wm.shape[1]
    head_n = max(128, _round_up(2 * act_dim, 128))  # lane-dense output width

    wh = jnp.concatenate([wm, ws], axis=1)
    wh = jnp.pad(wh, ((0, 0), (0, head_n - 2 * act_dim)))
    bh = jnp.concatenate([bm, bs], axis=1)
    bh = jnp.pad(bh, ((0, 0), (0, head_n - 2 * act_dim)))

    lane = jnp.arange(head_n)
    mask = ((lane >= act_dim) & (lane < 2 * act_dim)).astype(jnp.float32)
    mask = mask.reshape(1, head_n)

    return dict(
        w1=params["w1"].astype(compute_dtype), b1=params["b1"].astype(jnp.float32),
        w2=params["w2"].astype(compute_dtype), b2=params["b2"].astype(jnp.float32),
        wh=wh.astype(compute_dtype), bh=bh.astype(jnp.float32),
        mask=mask,
        act_dim=act_dim, head_n=head_n,
    )


def _choose_tile(B, tm):
    """Batch tile: multiple of 8 sublanes, capped at tm, and small enough that
    the grid has >=2 steps when B allows it (so v7x's two TCs both get work)."""
    half = _round_up(pl.cdiv(max(B, 1), 2), 8)
    return max(8, min(tm, half))


def actor_forward(x, packed, *, tm=1024):
    """x: (B, obs_dim) float32. packed: output of pack_actor_params.
    Returns (mean, log_std), both (B, act_dim) float32."""
    B, obs_dim = x.shape
    H = packed["w1"].shape[1]
    act_dim = packed["act_dim"]
    head_n = packed["head_n"]

    tm_eff = _choose_tile(B, tm)
    grid = (pl.cdiv(B, tm_eff),)   # partial last block handled by Pallas clipping

    wbytes = lambda a: a.size * a.dtype.itemsize
    cost = pl.CostEstimate(
        flops=2 * B * (obs_dim * H + H * H + H * head_n),
        transcendentals=B * head_n,
        bytes_accessed=(x.size * 4
                        + wbytes(packed["w1"]) + wbytes(packed["w2"])
                        + wbytes(packed["wh"])
                        + wbytes(packed["b1"]) + wbytes(packed["b2"])
                        + wbytes(packed["bh"]) + wbytes(packed["mask"])
                        + B * head_n * 4),
    )

    grid_spec = pltpu.PrefetchScalarGridSpec(
        num_scalar_prefetch=0,
        grid=grid,
        in_specs=[
            pl.BlockSpec((tm_eff, obs_dim), lambda i: (i, 0)),   # x tile
            pl.BlockSpec((obs_dim, H), lambda i: (0, 0)),        # w1 (resident)
            pl.BlockSpec((1, H), lambda i: (0, 0)),              # b1
            pl.BlockSpec((H, H), lambda i: (0, 0)),              # w2
            pl.BlockSpec((1, H), lambda i: (0, 0)),              # b2
            pl.BlockSpec((H, head_n), lambda i: (0, 0)),         # fused head weights
            pl.BlockSpec((1, head_n), lambda i: (0, 0)),         # fused head bias
            pl.BlockSpec((1, head_n), lambda i: (0, 0)),         # log_std lane mask
        ],
        out_specs=pl.BlockSpec((tm_eff, head_n), lambda i: (i, 0)),
    )

    out = pl.pallas_call(
        actor_kernel,
        out_shape=jax.ShapeDtypeStruct((B, head_n), jnp.float32),
        grid_spec=grid_spec,
        compiler_params=pltpu.CompilerParams(
            # Batch tiles are independent -> "parallel" (megacore sharding on
            # v7x; harmless single-TC loop on v5e/v6e).
            # TODO(synk): on v7x, benchmark pltpu.CORE_PARALLEL here and confirm
            # both TensorCores run in the trace.
            dimension_semantics=("parallel",),
        ),
        cost_estimate=cost,
    )(
        x,
        packed["w1"], packed["b1"],
        packed["w2"], packed["b2"],
        packed["wh"], packed["bh"],
        packed["mask"],
    )

    # Single contiguous slice of the valid lanes, then split (avoids re-reading
    # the whole 128-lane slab twice).
    head = out[:, :2 * act_dim]
    mean = head[:, :act_dim]
    log_std = head[:, act_dim:]
    return mean, log_std


def init_params(key, obs_dim, act_dim, hidden=256):
    """PyTorch-Linear-style uniform init U[-1/sqrt(fan_in), 1/sqrt(fan_in)].
    Weights stored pre-transposed as (in, out) so the kernel computes x @ W + b."""
    def linear(key, fan_in, fan_out):
        kw, kb = jax.random.split(key)
        bound = 1.0 / jnp.sqrt(jnp.float32(fan_in))
        w = jax.random.uniform(kw, (fan_in, fan_out), jnp.float32, -bound, bound)
        b = jax.random.uniform(kb, (1, fan_out), jnp.float32, -bound, bound)
        return w, b

    k1, k2, k3, k4 = jax.random.split(key, 4)
    w1, b1 = linear(k1, obs_dim, hidden)
    w2, b2 = linear(k2, hidden, hidden)
    wm, bm = linear(k3, hidden, act_dim)
    ws, bs = linear(k4, hidden, act_dim)
    return dict(w1=w1, b1=b1, w2=w2, b2=b2, wm=wm, bm=bm, ws=ws, bs=bs)


def actor_forward_ref(x, p):
    """Pure-JAX f32 reference of the PyTorch Actor.forward."""
    h1 = jnp.maximum(x @ p["w1"] + p["b1"], 0.0)
    h2 = jnp.maximum(h1 @ p["w2"] + p["b2"], 0.0)
    mean = h2 @ p["wm"] + p["bm"]
    ls = jnp.tanh(h2 @ p["ws"] + p["bs"])
    ls = LOG_STD_MIN + 0.5 * (LOG_STD_MAX - LOG_STD_MIN) * (ls + 1.0)
    return mean, ls


if __name__ == "__main__":
    key = jax.random.PRNGKey(0)
    k_x, k_x2, k_p = jax.random.split(key, 3)

    obs_dim = 16   # flattened single_observation_space
    act_dim = 8    # np.prod(single_action_space.shape)
    hidden = 256

    params = init_params(k_p, obs_dim, act_dim, hidden=hidden)
    packed_bf16 = pack_actor_params(params, compute_dtype=jnp.bfloat16)  # fast path
    packed_f32 = pack_actor_params(params, compute_dtype=jnp.float32)    # parity path

    mean_check = lambda a, b, atol, rtol: bool(jnp.allclose(a, b, atol=atol, rtol=rtol))

    # Case 1: multi-tile training batch, f32 mode -> exact parity with reference.
    x = jax.random.normal(k_x, (256, obs_dim), dtype=jnp.float32)
    mean_ref, log_std_ref = actor_forward_ref(x, params)
    mean, log_std = jax.block_until_ready(actor_forward(x, packed_f32))
    assert mean.shape == (256, act_dim) and log_std.shape == (256, act_dim)
    assert mean_check(mean, mean_ref, 1e-5, 1e-5)
    assert mean_check(log_std, log_std_ref, 1e-5, 1e-5)

    # Case 2: same batch, bf16 MXU operands (default fast path) -> loose tolerance.
    mean_b, log_std_b = jax.block_until_ready(actor_forward(x, packed_bf16))
    assert mean_check(mean_b, mean_ref, 3e-2, 3e-2)
    assert mean_check(log_std_b, log_std_ref, 3e-2, 3e-2)
    assert bool(jnp.all(log_std_b >= LOG_STD_MIN)) and bool(jnp.all(log_std_b <= LOG_STD_MAX))

    # Case 3: tiny, non-multiple-of-8 action-selection batch (partial tile /
    # clipped last block path, single grid step).
    x_small = jax.random.normal(k_x2, (5, obs_dim), dtype=jnp.float32)
    mean_s_ref, log_std_s_ref = actor_forward_ref(x_small, params)
    mean_s, log_std_s = jax.block_until_ready(actor_forward(x_small, packed_bf16))
    assert mean_s.shape == (5, act_dim) and log_std_s.shape == (5, act_dim)
    assert mean_check(mean_s, mean_s_ref, 3e-2, 3e-2)
    assert mean_check(log_std_s, log_std_s_ref, 3e-2, 3e-2)

    print("KERNEL_OK")
</pallas_src>

<mosaic_0001>
module attributes {stable_mosaic.version = 11 : i64} {
  func.func @actor_kernel(%arg0: i32, %arg1: memref<128x16xf32, #tpu.memory_space<vmem>>, %arg2: memref<16x256xf32, #tpu.memory_space<vmem>>, %arg3: memref<1x256xf32, #tpu.memory_space<vmem>>, %arg4: memref<256x256xf32, #tpu.memory_space<vmem>>, %arg5: memref<1x256xf32, #tpu.memory_space<vmem>>, %arg6: memref<256x128xf32, #tpu.memory_space<vmem>>, %arg7: memref<1x128xf32, #tpu.memory_space<vmem>>, %arg8: memref<1x128xf32, #tpu.memory_space<vmem>>, %arg9: memref<128x128xf32, #tpu.memory_space<vmem>>) attributes {dimension_semantics = [#tpu.dimension_semantics<parallel>], iteration_bounds = array<i64: 2>, scalar_prefetch = 0 : i64, scratch_operands = 0 : i64, tpu.core_type = #tpu.core_type<tc>, window_params = [{transform_indices = @transform_0, window_bounds = array<i64: 128, 16>}, {pipeline_mode = #tpu.pipeline_mode<synchronous>, transform_indices = @transform_1, window_bounds = array<i64: 16, 256>}, {pipeline_mode = #tpu.pipeline_mode<synchronous>, transform_indices = @transform_2, window_bounds = array<i64: 1, 256>}, {pipeline_mode = #tpu.pipeline_mode<synchronous>, transform_indices = @transform_3, window_bounds = array<i64: 256, 256>}, {pipeline_mode = #tpu.pipeline_mode<synchronous>, transform_indices = @transform_4, window_bounds = array<i64: 1, 256>}, {pipeline_mode = #tpu.pipeline_mode<synchronous>, transform_indices = @transform_5, window_bounds = array<i64: 256, 128>}, {pipeline_mode = #tpu.pipeline_mode<synchronous>, transform_indices = @transform_6, window_bounds = array<i64: 1, 128>}, {pipeline_mode = #tpu.pipeline_mode<synchronous>, transform_indices = @transform_7, window_bounds = array<i64: 1, 128>}, {transform_indices = @transform_8, window_bounds = array<i64: 128, 128>}]} {
    %c0 = arith.constant 0 : index
    %c0_0 = arith.constant 0 : index
    %0 = vector.load %arg1[%c0, %c0_0] : memref<128x16xf32, #tpu.memory_space<vmem>>, vector<128x16xf32>
    %c0_1 = arith.constant 0 : index
    %c0_2 = arith.constant 0 : index
    %1 = vector.load %arg2[%c0_1, %c0_2] : memref<16x256xf32, #tpu.memory_space<vmem>>, vector<16x256xf32>
    %cst = arith.constant dense<0.000000e+00> : vector<128x256xf32>
    %2 = tpu.matmul %0, %1, %cst {dimension_numbers = #tpu.dot_dimension_numbers<[1], [0], [0], [1], [0, 0, 1, 1], [], []>} : vector<128x16xf32>, vector<16x256xf32>, vector<128x256xf32> -> vector<128x256xf32>
    %c0_3 = arith.constant 0 : index
    %c0_4 = arith.constant 0 : index
    %3 = vector.load %arg3[%c0_3, %c0_4] : memref<1x256xf32, #tpu.memory_space<vmem>>, vector<1x256xf32>
    %4 = vector.broadcast %3 : vector<1x256xf32> to vector<128x256xf32>
    %5 = arith.addf %2, %4 : vector<128x256xf32>
    %cst_5 = arith.constant 0.000000e+00 : f32
    %6 = vector.broadcast %cst_5 : f32 to vector<128x256xf32>
    %7 = arith.maximumf %5, %6 : vector<128x256xf32>
    %c0_6 = arith.constant 0 : index
    %c0_7 = arith.constant 0 : index
    %8 = vector.load %arg4[%c0_6, %c0_7] : memref<256x256xf32, #tpu.memory_space<vmem>>, vector<256x256xf32>
    %cst_8 = arith.constant dense<0.000000e+00> : vector<128x256xf32>
    %9 = tpu.matmul %7, %8, %cst_8 {dimension_numbers = #tpu.dot_dimension_numbers<[1], [0], [0], [1], [0, 0, 1, 1], [], []>} : vector<128x256xf32>, vector<256x256xf32>, vector<128x256xf32> -> vector<128x256xf32>
    %c0_9 = arith.constant 0 : index
    %c0_10 = arith.constant 0 : index
    %10 = vector.load %arg5[%c0_9, %c0_10] : memref<1x256xf32, #tpu.memory_space<vmem>>, vector<1x256xf32>
    %11 = vector.broadcast %10 : vector<1x256xf32> to vector<128x256xf32>
    %12 = arith.addf %9, %11 : vector<128x256xf32>
    %cst_11 = arith.constant 0.000000e+00 : f32
    %13 = vector.broadcast %cst_11 : f32 to vector<128x256xf32>
    %14 = arith.maximumf %12, %13 : vector<128x256xf32>
    %c0_12 = arith.constant 0 : index
    %c0_13 = arith.constant 0 : index
    %15 = vector.load %arg6[%c0_12, %c0_13] : memref<256x128xf32, #tpu.memory_space<vmem>>, vector<256x128xf32>
    %cst_14 = arith.constant dense<0.000000e+00> : vector<128x128xf32>
    %16 = tpu.matmul %14, %15, %cst_14 {dimension_numbers = #tpu.dot_dimension_numbers<[1], [0], [0], [1], [0, 0, 1, 1], [], []>} : vector<128x256xf32>, vector<256x128xf32>, vector<128x128xf32> -> vector<128x128xf32>
    %c0_15 = arith.constant 0 : index
    %c0_16 = arith.constant 0 : index
    %17 = vector.load %arg7[%c0_15, %c0_16] : memref<1x128xf32, #tpu.memory_space<vmem>>, vector<1x128xf32>
    %18 = vector.broadcast %17 : vector<1x128xf32> to vector<128x128xf32>
    %19 = arith.addf %16, %18 : vector<128x128xf32>
    %20 = math.tanh %19 : vector<128x128xf32>
    %cst_17 = arith.constant 3.500000e+00 : f32
    %21 = vector.broadcast %cst_17 : f32 to vector<128x128xf32>
    %22 = arith.mulf %21, %20 : vector<128x128xf32>
    %cst_18 = arith.constant -1.500000e+00 : f32
    %23 = vector.broadcast %cst_18 : f32 to vector<128x128xf32>
    %24 = arith.addf %23, %22 : vector<128x128xf32>
    %c0_19 = arith.constant 0 : index
    %c0_20 = arith.constant 0 : index
    %25 = vector.load %arg8[%c0_19, %c0_20] : memref<1x128xf32, #tpu.memory_space<vmem>>, vector<1x128xf32>
    %26 = arith.subf %24, %19 : vector<128x128xf32>
    %27 = vector.broadcast %25 : vector<1x128xf32> to vector<128x128xf32>
    %28 = arith.mulf %27, %26 : vector<128x128xf32>
    %29 = arith.addf %19, %28 : vector<128x128xf32>
    %c0_21 = arith.constant 0 : index
    %c0_22 = arith.constant 0 : index
    %30 = vector.load %arg9[%c0_21, %c0_22] : memref<128x128xf32, #tpu.memory_space<vmem>>, vector<128x128xf32>
    tpu.vector_store %arg9[%c0_21, %c0_22], %29 {strides = array<i32>} : memref<128x128xf32, #tpu.memory_space<vmem>>, vector<128x128xf32>,
    return
  }
  func.func @transform_0(%arg0: i32) -> (i32, i32) {
    %c0_i32 = arith.constant 0 : i32
    %c0_i32_0 = arith.constant 0 : i32
    return %arg0, %c0_i32 : i32, i32
  }
  func.func @transform_1(%arg0: i32) -> (i32, i32) {
    %c0_i32 = arith.constant 0 : i32
    %c0_i32_0 = arith.constant 0 : i32
    %c0_i32_1 = arith.constant 0 : i32
    return %c0_i32, %c0_i32_0 : i32, i32
  }
  func.func @transform_2(%arg0: i32) -> (i32, i32) {
    %c0_i32 = arith.constant 0 : i32
    %c0_i32_0 = arith.constant 0 : i32
    %c0_i32_1 = arith.constant 0 : i32
    return %c0_i32, %c0_i32_0 : i32, i32
  }
  func.func @transform_3(%arg0: i32) -> (i32, i32) {
    %c0_i32 = arith.constant 0 : i32
    %c0_i32_0 = arith.constant 0 : i32
    %c0_i32_1 = arith.constant 0 : i32
    return %c0_i32, %c0_i32_0 : i32, i32
  }
  func.func @transform_4(%arg0: i32) -> (i32, i32) {
    %c0_i32 = arith.constant 0 : i32
    %c0_i32_0 = arith.constant 0 : i32
    %c0_i32_1 = arith.constant 0 : i32
    return %c0_i32, %c0_i32_0 : i32, i32
  }
  func.func @transform_5(%arg0: i32) -> (i32, i32) {
    %c0_i32 = arith.constant 0 : i32
    %c0_i32_0 = arith.constant 0 : i32
    %c0_i32_1 = arith.constant 0 : i32
    return %c0_i32, %c0_i32_0 : i32, i32
  }
  func.func @transform_6(%arg0: i32) -> (i32, i32) {
    %c0_i32 = arith.constant 0 : i32
    %c0_i32_0 = arith.constant 0 : i32
    %c0_i32_1 = arith.constant 0 : i32
    return %c0_i32, %c0_i32_0 : i32, i32
  }
  func.func @transform_7(%arg0: i32) -> (i32, i32) {
    %c0_i32 = arith.constant 0 : i32
    %c0_i32_0 = arith.constant 0 : i32
    %c0_i32_1 = arith.constant 0 : i32
    return %c0_i32, %c0_i32_0 : i32, i32
  }
  func.func @transform_8(%arg0: i32) -> (i32, i32) {
    %c0_i32 = arith.constant 0 : i32
    %c0_i32_0 = arith.constant 0 : i32
    return %arg0, %c0_i32 : i32, i32
  }
}

</mosaic_0001>

<bundles_post_ra>
// kernel: tpu_custom_call.1
= control target key start
LH: loop header
LB: loop body
LE: loop exit
PB: predicated region body
PF: predicated region fallthrough
CT: control target
= control target key end

     0   :  { %13 = vsyncpa [#allocation3], 0  ;;  %s2159_s0 = inlined_call_operand.vmem [shape: f32[256,16], index: 0, kind: input, shape index: {}]   ;;  %s2160_s1 = inlined_call_operand.vmem [shape: f32[16,256], index: 1, kind: input, shape index: {}]   ;;  %s2161_s2 = inlined_call_operand.vmem [shape: f32[1,256], index: 2, kind: input, shape index: {}]   ;;  %s2162_s3 = inlined_call_operand.hbm [shape: f32[256,256], index: 3, kind: input, shape index: {}]   ;;  %s2163_s4 = inlined_call_operand.vmem [shape: f32[1,256], index: 4, kind: input, shape index: {}]   ;;  %s2164_s5 = inlined_call_operand.vmem [shape: f32[256,128], index: 5, kind: input, shape index: {}]   ;;  %s2165_s6 = inlined_call_operand.vmem [shape: f32[1,128], index: 6, kind: input, shape index: {}]   ;;  %s2166_s7 = inlined_call_operand.vmem [shape: f32[1,128], index: 7, kind: input, shape index: {}]   ;;  %s2167_s8 = inlined_call_operand.hbm [shape: f32[256,128], index: 8, kind: output, shape index: {}]  }
   0x1   :  { %14 = vsyncpa [#allocation4], 0 }
   0x2   :  { %16 = vsyncpa [#allocation4 + $0x1], 0  ;;  %s1704_s27 = smov 0   ;;  %s1706_s28 = smov 0  }
   0x3   :  { %s1708_s29 = smov 0   ;;  %s1710_s30 = smov 0  }
   0x4 LB: > { %s1725_s9 = sadd.s32 4294967295, %s1650_s30   ;;  %s1256_s10 = sadd.s32 4294967294, %s1650_s30   ;;  %s1650_s30 = sphi %s1710_s30, %s2183_s30   ;;  %s1646_s29 = sphi %s1708_s29, %s2182_s29   ;;  %s1642_s28 = sphi %s1706_s28, %s2181_s28   ;;  %s1638_s27 = sphi %s1704_s27, %s2180_s27  }
   0x5   : > { %s1729_s11 = sadd.s32 1, %s1650_s30   ;;  %s202_s12 = sadd.s32 1, %s1646_s29 }
   0x6   : > { %s199_s13 = ssub.s32 %s1650_s30, %s1729_s11  ;;  %p212_p0 = scmp.ne.s32.totalorder %s1646_s29, %s1642_s28 }
   0x7   : > { %p200_p1 = scmp.eq.s32.totalorder %s199_s13, 0  ;;  %p213_p2 = scmp.eq.s32.totalorder %s1725_s9, 1 }
   0x8   : > { %p218_p3 = scmp.ne.s32.totalorder %s1642_s28, %s1638_s27  ;;  %p219_p4 = scmp.eq.s32.totalorder %s1256_s10, 1 }
   0x9   : > { %s1740_s14 = scalar_select %p200_p1, %s1646_s29, %s202_s12  }
   0xa   : > { %p1742_p5 = por %p213_p2, %p212_p0  ;;  %p1746_p6 = por %p219_p4, %p218_p3 }
   0xb   : > { %p1257_p7 = scmp.ge.s32.totalorder %s1650_s30, 1  ;;  %p226_p8 = scmp.lt.s32.totalorder %s1650_s30, 3 }
   0xc   : > { %s2171_s15 = scalar_select %p1742_p5, 1, 0 }
   0xd   : > { %s2172_s16 = scalar_select %p1746_p6, 1, 0 }
   0xe   : > { %p2168_p9 = scmp.eq.s32.totalorder %s1725_s9, 0  ;;  %p1753_p10 = pnand %p1257_p7, %p226_p8 }
   0xf   : > { %s1652_s18 = smov [#allocation2]   ;;  %s1556_s23 = scalar_lea.hbm %s2162_s3, 8192 }
  0x10   : > { %s2173_s17 = scalar_select %p1753_p10, 1, 0 }
  0x11   : > { %s244_s19 = sshll.u32 %s1652_s18, 4  ;;  %p1475_p11 = pneg %p1753_p10  ;;  %s245_s19 = int_to_ptr.vmem [resolvable:$true] %s244_s19 }
  0x12   : > { %p1557_p13 = scmp.ne.s32.totalorder %s2162_s3, %s1556_s23  ;;  %p1563_p3 = scmp.lt.u32.totalorder %s1556_s23, %s2162_s3 }
  0x13   : > { %p1761_p12 = pnand %p2168_p9, %p1475_p11 }
  0x15   : > { %p1558_p0 = pneg %p1761_p12 }
  0x17   : > { %p1559_p1 = pnand %p1558_p0, %p1557_p13 }
  0x19   : > { %p1560_p2 = pneg %p1559_p1 }
  0x1b   : > { %p1565_p4 = pnand %p1563_p3, %p1560_p2 }
  0x1d   : > { %1568 = shalt.err (!%p1565_p4)
}
  0x1e   : > { %s1569_s12 = scalar_lea.vmem %s245_s19, 8192  ;;  %p1577_p9 = scmp.lt.s32.totalorder %s245_s19, %s245_s19 }
  0x1f   : > { %p1570_p7 = scmp.ne.s32.totalorder %s245_s19, %s1569_s12  ;;  %p1578_p6 = scmp.lt.s32.totalorder %s1569_s12, %s1569_s12 }
  0x21   : > { %p1572_p8 = pnand %p1570_p7, %p1558_p0  ;;  %p1579_p5 = por %p1578_p6, %p1577_p9 }
  0x23   : > { %p1573_p11 = pneg %p1572_p8 }
  0x25   : > { %p1580_p10 = pnand %p1579_p5, %p1573_p11 }
  0x27   : > { %1583 = shalt.err (!%p1580_p10)
}
  0x28   : > { %s1653_s13 = smov 256   ;;  %s1654_s18 = smov 16  }
  0x29   : > { %1478 = dma.hbm_to_vmem [thread:$0]  (!%p1761_p12), %s2162_s3, 8192, %s245_s19, [#allocation3], %s1653_s13, %s1653_s13, %s1654_s18  }
  0x2a   : > { %p2175_p13 = scmp.ne.s32.totalorder %s2173_s17, 0 }
  0x2b   : > { %p2176_p1 = scmp.eq.s32.totalorder (!%p2175_p13), %s1725_s9, 0 }
  0x2c   : > { %281 = sbr.rel (%p2175_p13) target bundleno = 808 (0x328), region = 52 }
  0x33   : > { %1629 = dma.done.wait (%p2176_p1), [#allocation3], 8192   ;;  %p2177_p0 = pmov %p2176_p1 }
  0x34   : > { %s1263_s23 = sshll.u32 %s1725_s9, 4  ;;  %v1655_v0 = vmov 0.0   ;;  %v339_v1 = vld [vmem:[%s2160_s1 + $0x8] sm:$0xff]  ;;  %v341_v2 = vld [vmem:[%s2160_s1 + $0x18] sm:$0xff]  ;;  %v338_v3 = vld [vmem:[%s2160_s1] sm:$0xff]  ;;  %vm354_vm0 = vcmask 130048  }
  0x35   : > { %1631 = vsyncadd (%p2177_p0), [#allocation3], 4294959104  ;;  %467 = vmatprep.mubr.f32.mxu0 %v1655_v0  ;;  %p316_p5 = scmp.lt.s32.totalorder %s1263_s23, 31  ;;  %v1369_v4 = vpack.c.bf16 %v341_v2, %v339_v1  ;;  %v340_v5 = vld [vmem:[%s2160_s1 + $0x10] sm:$0xff]  ;;  %v597_v9 = vld [vmem:[#allocation2 + $0x8] sm:$0xff]  ;;  %s312_s19 = sand.u32 1, %s1642_s28  }
  0x36   : > { %v1371_v6 = vpack.c.bf16 %v340_v5, %v338_v3  ;;  %v599_v10 = vld [vmem:[#allocation2 + $0x18] sm:$0xff]  ;;  %v596_v11 = vld [vmem:[#allocation2] sm:$0xff]  ;;  %v598_v12 = vld [vmem:[#allocation2 + $0x10] sm:$0xff]  ;;  %s1262_s12 = sshll.u32 %s312_s19, 7  ;;  %s1288_s18 = sshll.u32 %s1725_s9, 11 }
  0x37   : > { %s2185_s23 = smov (!%p316_p5, %s1263_s23), 31  ;;  %1370 = vmatprep.subr.bf16.mxu0 %v1369_v4  ;;  %v1373_v13 = vpack.c.bf16 %v599_v10, %v597_v9  ;;  %v1375_v14 = vpack.c.bf16 %v598_v12, %v596_v11  ;;  %v601_v15 = vld [vmem:[#allocation2 + $0x28] sm:$0xff]  ;;  %v603_v16 = vld [vmem:[#allocation2 + $0x38] sm:$0xff]  ;;  %v600_v17 = vld [vmem:[#allocation2 + $0x20] sm:$0xff]  ;;  %s2062_s13 = scalar_lea.vmem [#allocation5], %s1262_s12 }
  0x38   : > { %s1264_s20 = sshll.u32 %s2185_s23, 3  ;;  %1372 = vmatpush1.bf16.msra.mxu0 %v1371_v6  ;;  %v1377_v18 = vpack.c.bf16 %v603_v16, %v601_v15  ;;  %v602_v19 = vld [vmem:[#allocation2 + $0x30] sm:$0xff]  ;;  %v605_v20 = vld [vmem:[#allocation2 + $0x48] sm:$0xff]  ;;  %v607_v21 = vld [vmem:[#allocation2 + $0x58] sm:$0xff]  ;;  %s1182_s21 = sshll.u32 %s2062_s13, 4  ;;  %s2113_s21 = int_to_ptr.vmem [resolvable:$true] %s1182_s21 }
  0x39   : > { %s1804_s22 = scalar_lea.vmem %s2159_s0, %s1264_s20  ;;  %1374 = vmatprep.subr.bf16.mxu1 %v1373_v13  ;;  %v1379_v22 = vpack.c.bf16 %v602_v19, %v600_v17  ;;  %v1381_v24 = vpack.c.bf16 %v607_v21, %v605_v20  ;;  %v604_v25 = vld [vmem:[#allocation2 + $0x40] sm:$0xff]  ;;  %v606_v26 = vld [vmem:[#allocation2 + $0x50] sm:$0xff]  ;;  %v609_v27 = vld [vmem:[#allocation2 + $0x68] sm:$0xff]  ;;  %s2111_s20 = scalar_lea.hbm %s2167_s8, %s1288_s18 }
  0x3a   : > { %v322_v7 = vld [vmem:[%s1804_s22] sm:$0xff]  ;;  %v323_v8 = vld [vmem:[%s1804_s22 + $0x8] sm:$0xff]  ;;  %1376 = vmatpush1.bf16.msra.mxu1 %v1375_v14  ;;  %v324_v23 = vld [vmem:[%s1804_s22 + $0x10] sm:$0xff]  ;;  %v1383_v29 = vpack.c.bf16 %v606_v26, %v604_v25  ;;  %s2118_s24 = scalar_lea.sflag [#allocation4], %s312_s19  ;;  %s1584_s9 = scalar_lea.vmem %s2113_s21, 2048 }
  0x3b   : > { %1265 = vmatmul.mubr.msk.f32.vlgmr.msra.gmra.mrb[0].mxu0 %vm354_vm0, %v322_v7  ;;  %1378 = vmatprep.subr.bf16.mxu1 %v1377_v18  ;;  %v611_v28 = vld [vmem:[#allocation2 + $0x78] sm:$0xff]  ;;  %v608_v32 = vld [vmem:[#allocation2 + $0x60] sm:$0xff]  ;;  %v610_v33 = vld [vmem:[#allocation2 + $0x70] sm:$0xff]  ;;  %p1585_p6 = scmp.ne.s32.totalorder %s2113_s21, %s1584_s9  ;;  %p2178_p9 = scmp.ne.s32.totalorder %s2171_s15, 0 }
  0x3c   : > { %473 = vmatprep.mubr.f32.mxu0 %v1655_v0  ;;  %v325_v30 = vld [vmem:[%s1804_s22 + $0x18] sm:$0xff]  ;;  %v1385_v31 = vpack.c.bf16 %v611_v28, %v609_v27  ;;  %v613_v34 = vld [vmem:[#allocation2 + $0x88] sm:$0xff]  ;;  %v1387_v36 = vpack.c.bf16 %v610_v33, %v608_v32  ;;  %v326_v37 = vld [vmem:[%s1804_s22 + $0x20] sm:$0xff]  ;;  %s1656_s25 = smov [#allocation5]  }
  0x3d   : > { %v615_v35 = vld [vmem:[#allocation2 + $0x98] sm:$0xff]  ;;  %v612_v39 = vld [vmem:[#allocation2 + $0x80] sm:$0xff]  ;;  %v614_v40 = vld [vmem:[#allocation2 + $0x90] sm:$0xff]  ;;  %p1586_p10 = pnand %p1585_p6, %p2178_p9  ;;  %s1588_s17 = sshll.u32 %s1656_s25, 4  ;;  %s1589_s17 = int_to_ptr.vmem [resolvable:$false] %s1588_s17 }
  0x3e   : > { %1380 = vmatpush1.bf16.msra.mxu1 %v1379_v22  ;;  %v1389_v38 = vpack.c.bf16 %v615_v35, %v613_v34  ;;  %v617_v41 = vld [vmem:[#allocation2 + $0xa8] sm:$0xff]  ;;  %v619_v42 = vld [vmem:[#allocation2 + $0xb8] sm:$0xff]  ;;  %v1391_v43 = vpack.c.bf16 %v614_v40, %v612_v39  ;;  %v616_v46 = vld [vmem:[#allocation2 + $0xa0] sm:$0xff]  ;;  %s1590_s26 = scalar_lea.vmem %s1589_s17, 4096  ;;  %p1591_p2 = scmp.lt.s32.totalorder %s2113_s21, %s1589_s17 }
  0x3f   : > { %1266 = vmatmul.mubr.msk.f32.gmra.mrb[2].mxu0 %vm354_vm0, %v323_v8  ;;  %1382 = vmatprep.subr.bf16.mxu1 %v1381_v24  ;;  %v327_v44 = vld [vmem:[%s1804_s22 + $0x28] sm:$0xff]  ;;  %v1393_v45 = vpack.c.bf16 %v619_v42, %v617_v41  ;;  %v618_v47 = vld [vmem:[#allocation2 + $0xb0] sm:$0xff]  ;;  %v623_v49 = vld [vmem:[#allocation2 + $0xd8] sm:$0xff]  ;;  %p1587_p12 = pneg %p1586_p10  ;;  %p1592_p3 = scmp.lt.s32.totalorder %s1590_s26, %s1584_s9 }
  0x40   : > { %479 = vmatprep.mubr.f32.mxu0 %v1655_v0  ;;  %v621_v48 = vld [vmem:[#allocation2 + $0xc8] sm:$0xff]  ;;  %v1395_v50 = vpack.c.bf16 %v618_v47, %v616_v46  ;;  %v328_v51 = vld [vmem:[%s1804_s22 + $0x30] sm:$0xff]  ;;  %v620_v53 = vld [vmem:[#allocation2 + $0xc0] sm:$0xff] }
  0x41   : > { %v1397_v52 = vpack.c.bf16 %v623_v49, %v621_v48  ;;  %v622_v54 = vld [vmem:[#allocation2 + $0xd0] sm:$0xff]  ;;  %v625_v55 = vld [vmem:[#allocation2 + $0xe8] sm:$0xff]  ;;  %v627_v56 = vld [vmem:[#allocation2 + $0xf8] sm:$0xff]  ;;  %p1593_p4 = por %p1592_p3, %p1591_p2 }
  0x42   : > { %1384 = vmatpush1.bf16.msra.mxu1 %v1383_v29  ;;  %v1399_v57 = vpack.c.bf16 %v622_v54, %v620_v53  ;;  %v329_v58 = vld [vmem:[%s1804_s22 + $0x38] sm:$0xff]  ;;  %v1401_v59 = vpack.c.bf16 %v627_v56, %v625_v55  ;;  %v624_v60 = vld [vmem:[#allocation2 + $0xe0] sm:$0xff]  ;;  %v626_v61 = vld [vmem:[#allocation2 + $0xf0] sm:$0xff] }
  0x43   : > { %1267 = vmatmul.mubr.msk.f32.gmra.mrb[4].mxu0 %vm354_vm0, %v324_v23  ;;  %1386 = vmatprep.subr.bf16.mxu1 %v1385_v31  ;;  %v629_v62 = vld [vmem:[#allocation2 + $0x108] sm:$0xff]  ;;  %v631_v63 = vld [vmem:[#allocation2 + $0x118] sm:$0xff]  ;;  %v1403_v1 = vpack.c.bf16 %v626_v61, %v624_v60  ;;  %v330_v2 = vld [vmem:[%s1804_s22 + $0x40] sm:$0xff]  ;;  %p1594_p7 = pnand %p1593_p4, %p1587_p12 }
  0x44   : > { %485 = vmatprep.mubr.f32.mxu0 %v1655_v0  ;;  %v1405_v3 = vpack.c.bf16 %v631_v63, %v629_v62  ;;  %v628_v4 = vld [vmem:[#allocation2 + $0x100] sm:$0xff]  ;;  %v630_v5 = vld [vmem:[#allocation2 + $0x110] sm:$0xff]  ;;  %v633_v6 = vld [vmem:[#allocation2 + $0x128] sm:$0xff] }
  0x45   : > { %v635_v7 = vld [vmem:[#allocation2 + $0x138] sm:$0xff]  ;;  %v1407_v8 = vpack.c.bf16 %v630_v5, %v628_v4  ;;  %v331_v9 = vld [vmem:[%s1804_s22 + $0x48] sm:$0xff]  ;;  %v632_v11 = vld [vmem:[#allocation2 + $0x120] sm:$0xff] }
  0x46   : > { %1388 = vmatpush1.bf16.msra.mxu1 %v1387_v36  ;;  %v1409_v10 = vpack.c.bf16 %v635_v7, %v633_v6  ;;  %v634_v12 = vld [vmem:[#allocation2 + $0x130] sm:$0xff]  ;;  %v637_v13 = vld [vmem:[#allocation2 + $0x148] sm:$0xff]  ;;  %v639_v14 = vld [vmem:[#allocation2 + $0x158] sm:$0xff] }
  0x47   : > { %1268 = vmatmul.mubr.msk.f32.gmra.mrb[6].mxu0 %vm354_vm0, %v325_v30  ;;  %1390 = vmatprep.subr.bf16.mxu1 %v1389_v38  ;;  %v1411_v15 = vpack.c.bf16 %v634_v12, %v632_v11  ;;  %v332_v16 = vld [vmem:[%s1804_s22 + $0x50] sm:$0xff]  ;;  %v1413_v17 = vpack.c.bf16 %v639_v14, %v637_v13  ;;  %v636_v18 = vld [vmem:[#allocation2 + $0x140] sm:$0xff]  ;;  %v641_v20 = vld [vmem:[#allocation2 + $0x168] sm:$0xff] }
  0x48   : > { %491 = vmatprep.mubr.f32.mxu0 %v1655_v0  ;;  %v638_v19 = vld [vmem:[#allocation2 + $0x150] sm:$0xff]  ;;  %v643_v21 = vld [vmem:[#allocation2 + $0x178] sm:$0xff]  ;;  %v640_v25 = vld [vmem:[#allocation2 + $0x160] sm:$0xff] }
  0x49   : > { %v1415_v22 = vpack.c.bf16 %v638_v19, %v636_v18  ;;  %v333_v23 = vld [vmem:[%s1804_s22 + $0x58] sm:$0xff]  ;;  %v1417_v24 = vpack.c.bf16 %v643_v21, %v641_v20  ;;  %v642_v26 = vld [vmem:[#allocation2 + $0x170] sm:$0xff]  ;;  %v645_v27 = vld [vmem:[#allocation2 + $0x188] sm:$0xff] }
  0x4a   : > { %1392 = vmatpush1.bf16.msra.mxu1 %v1391_v43  ;;  %v647_v28 = vld [vmem:[#allocation2 + $0x198] sm:$0xff]  ;;  %v1419_v29 = vpack.c.bf16 %v642_v26, %v640_v25  ;;  %v334_v30 = vld [vmem:[%s1804_s22 + $0x60] sm:$0xff]  ;;  %v646_v33 = vld [vmem:[#allocation2 + $0x190] sm:$0xff] }
  0x4b   : > { %1269 = vmatmul.mubr.msk.f32.gmra.mrb[8].mxu0 %vm354_vm0, %v326_v37  ;;  %1394 = vmatprep.subr.bf16.mxu1 %v1393_v45  ;;  %v1421_v31 = vpack.c.bf16 %v647_v28, %v645_v27  ;;  %v644_v32 = vld [vmem:[#allocation2 + $0x180] sm:$0xff]  ;;  %v649_v34 = vld [vmem:[#allocation2 + $0x1a8] sm:$0xff]  ;;  %v651_v35 = vld [vmem:[#allocation2 + $0x1b8] sm:$0xff] }
  0x4c   : > { %497 = vmatprep.mubr.f32.mxu0 %v1655_v0  ;;  %v1423_v36 = vpack.c.bf16 %v646_v33, %v644_v32  ;;  %v335_v37 = vld [vmem:[%s1804_s22 + $0x68] sm:$0xff]  ;;  %v1425_v38 = vpack.c.bf16 %v651_v35, %v649_v34  ;;  %v648_v39 = vld [vmem:[#allocation2 + $0x1a0] sm:$0xff]  ;;  %v650_v40 = vld [vmem:[#allocation2 + $0x1b0] sm:$0xff] }
  0x4d   : > { %v653_v41 = vld [vmem:[#allocation2 + $0x1c8] sm:$0xff]  ;;  %v655_v42 = vld [vmem:[#allocation2 + $0x1d8] sm:$0xff]  ;;  %v1427_v43 = vpack.c.bf16 %v650_v40, %v648_v39  ;;  %v652_v47 = vld [vmem:[#allocation2 + $0x1c0] sm:$0xff]  ;;  %v344_v40 = vlaneseq }
  0x4e   : > { %1396 = vmatpush1.bf16.msra.mxu1 %v1395_v50  ;;  %v1429_v45 = vpack.c.bf16 %v655_v42, %v653_v41  ;;  %v337_v46 = vld [vmem:[%s1804_s22 + $0x78] sm:$0xff]  ;;  %v654_v48 = vld [vmem:[#allocation2 + $0x1d0] sm:$0xff]  ;;  %v657_v50 = vld [vmem:[#allocation2 + $0x1e8] sm:$0xff] }
  0x4f   : > { %1270 = vmatmul.mubr.msk.f32.gmra.mrb[10].mxu0 %vm354_vm0, %v327_v44  ;;  %1398 = vmatprep.subr.bf16.mxu1 %v1397_v52  ;;  %v336_v44 = vld [vmem:[%s1804_s22 + $0x70] sm:$0xff]  ;;  %v1431_v49 = vpack.c.bf16 %v654_v48, %v652_v47  ;;  %v656_v53 = vld [vmem:[#allocation2 + $0x1e0] sm:$0xff]  ;;  %v882_v56 = vld [vmem:[%s2164_s5 + $0x88] sm:$0xff]  ;;  %v1949_v41 = vshrl.u32 %v344_v40, 7 }
  0x50   : > { %503 = vmatprep.mubr.f32.mxu0 %v1655_v0  ;;  %v658_v54 = vld [vmem:[#allocation2 + $0x1f0] sm:$0xff]  ;;  %v884_v61 = vld [vmem:[%s2164_s5 + $0x98] sm:$0xff]  ;;  %v886_v4 = vld [vmem:[%s2164_s5 + $0xa8] sm:$0xff] }
  0x51   : > { %v1435_v55 = vpack.c.bf16 %v658_v54, %v656_v53  ;;  %v883_v60 = vld [vmem:[%s2164_s5 + $0x90] sm:$0xff]  ;;  %v869_v7 = vld [vmem:[%s2164_s5 + $0x20] sm:$0xff]  ;;  %v872_v14 = vld [vmem:[%s2164_s5 + $0x38] sm:$0xff]  ;;  %v346_v42 = vsub.s32 0, %v1949_v41 }
  0x52   : > { %1400 = vmatpush1.bf16.msra.mxu1 %v1399_v57  ;;  %v865_v57 = vld [vmem:[%s2164_s5] sm:$0xff]  ;;  %v1441_v63 = vpack.c.bf16 %v884_v61, %v883_v60  ;;  %v871_v13 = vld [vmem:[%s2164_s5 + $0x30] sm:$0xff]  ;;  %v874_v20 = vld [vmem:[%s2164_s5 + $0x48] sm:$0xff] }
  0x53   : > { %1271 = vmatmul.mubr.msk.f32.gmra.mrb[12].mxu0 %vm354_vm0, %v328_v51  ;;  %1402 = vmatprep.subr.bf16.mxu1 %v1401_v59  ;;  %v659_v51 = vld [vmem:[#allocation2 + $0x1f8] sm:$0xff]  ;;  %v866_v59 = vld [vmem:[%s2164_s5 + $0x8] sm:$0xff]  ;;  %v873_v19 = vld [vmem:[%s2164_s5 + $0x40] sm:$0xff] }
  0x54   : > { %509 = vmatprep.mubr.f32.mxu0 %v1655_v0  ;;  %v1433_v52 = vpack.c.bf16 %v659_v51, %v657_v50  ;;  %v1439_v62 = vpack.c.bf16 %v866_v59, %v865_v57  ;;  %v891_v21 = vld [vmem:[%s2164_s5 + $0xd0] sm:$0xff]  ;;  %v876_v26 = vld [vmem:[%s2164_s5 + $0x58] sm:$0xff]  ;;  %v893_v27 = vld [vmem:[%s2164_s5 + $0xe0] sm:$0xff] }
  0x55   : > { %v875_v25 = vld [vmem:[%s2164_s5 + $0x50] sm:$0xff]  ;;  %v894_v28 = vld [vmem:[%s2164_s5 + $0xe8] sm:$0xff]  ;;  %v896_v34 = vld [vmem:[%s2164_s5 + $0xf8] sm:$0xff] }
  0x56   : > { %1404 = vmatpush1.bf16.msra.mxu1 %v1403_v1  ;;  %v867_v1 = vld [vmem:[%s2164_s5 + $0x10] sm:$0xff]  ;;  %v878_v32 = vld [vmem:[%s2164_s5 + $0x68] sm:$0xff] }
  0x57   : > { %1272 = vmatmul.mubr.msk.f32.gmra.mrb[14].mxu0 %vm354_vm0, %v329_v58  ;;  %1406 = vmatprep.subr.bf16.mxu1 %v1405_v3  ;;  %v885_v3 = vld [vmem:[%s2164_s5 + $0xa0] sm:$0xff]  ;;  %v895_v33 = vld [vmem:[%s2164_s5 + $0xf0] sm:$0xff] }
  0x58   : > { %515 = vmatprep.mubr.f32.mxu0 %v1655_v0  ;;  %v1445_v6 = vpack.c.bf16 %v886_v4, %v885_v3 }
  0x5a   : > { %1408 = vmatpush1.bf16.msra.mxu1 %v1407_v8  ;;  %v870_v8 = vld [vmem:[%s2164_s5 + $0x28] sm:$0xff] }
  0x5b   : > { %1273 = vmatmul.mubr.msk.f32.gmra.mrb[16].mxu0 %vm354_vm0, %v330_v2  ;;  %1410 = vmatprep.subr.bf16.mxu1 %v1409_v10  ;;  %v868_v2 = vld [vmem:[%s2164_s5 + $0x18] sm:$0xff]  ;;  %v1447_v11 = vpack.c.bf16 %v870_v8, %v869_v7 }
  0x5c   : > { %521 = vmatprep.mubr.f32.mxu0 %v1655_v0  ;;  %v1443_v5 = vpack.c.bf16 %v868_v2, %v867_v1  ;;  %v888_v10 = vld [vmem:[%s2164_s5 + $0xb8] sm:$0xff] }
  0x5e   : > { %1412 = vmatpush1.bf16.msra.mxu1 %v1411_v15  ;;  %v889_v15 = vld [vmem:[%s2164_s5 + $0xc0] sm:$0xff] }
  0x5f   : > { %1274 = vmatmul.mubr.msk.f32.gmra.mrb[18].mxu0 %vm354_vm0, %v331_v9  ;;  %1414 = vmatprep.subr.bf16.mxu1 %v1413_v17  ;;  %v887_v9 = vld [vmem:[%s2164_s5 + $0xb0] sm:$0xff]  ;;  %v1451_v17 = vpack.c.bf16 %v872_v14, %v871_v13 }
  0x60   : > { %527 = vmatprep.mubr.f32.mxu0 %v1655_v0  ;;  %v1449_v12 = vpack.c.bf16 %v888_v10, %v887_v9 }
  0x62   : > { %1416 = vmatpush1.bf16.msra.mxu1 %v1415_v22  ;;  %v892_v22 = vld [vmem:[%s2164_s5 + $0xd8] sm:$0xff] }
  0x63   : > { %1275 = vmatmul.mubr.msk.f32.gmra.mrb[20].mxu0 %vm354_vm0, %v332_v16  ;;  %1418 = vmatprep.subr.bf16.mxu1 %v1417_v24  ;;  %v890_v16 = vld [vmem:[%s2164_s5 + $0xc8] sm:$0xff]  ;;  %v1457_v24 = vpack.c.bf16 %v892_v22, %v891_v21 }
  0x64   : > { %533 = vmatprep.mubr.f32.mxu0 %v1655_v0  ;;  %v1453_v18 = vpack.c.bf16 %v890_v16, %v889_v15 }
  0x66   : > { %1420 = vmatpush1.bf16.msra.mxu1 %v1419_v29  ;;  %v1459_v29 = vpack.c.bf16 %v876_v26, %v875_v25 }
  0x67   : > { %1276 = vmatmul.mubr.msk.f32.gmra.mrb[22].mxu0 %vm354_vm0, %v333_v23  ;;  %1422 = vmatprep.subr.bf16.mxu1 %v1421_v31  ;;  %v1455_v23 = vpack.c.bf16 %v874_v20, %v873_v19  ;;  %v877_v31 = vld [vmem:[%s2164_s5 + $0x60] sm:$0xff] }
  0x68   : > { %539 = vmatprep.mubr.f32.mxu0 %v1655_v0  ;;  %v1463_v35 = vpack.c.bf16 %v878_v32, %v877_v31 }
  0x6a   : > { %1424 = vmatpush1.bf16.msra.mxu1 %v1423_v36  ;;  %v1465_v36 = vpack.c.bf16 %v896_v34, %v895_v33 }
  0x6b   : > { %1277 = vmatmul.mubr.msk.f32.gmra.mrb[24].mxu0 %vm354_vm0, %v334_v30  ;;  %1426 = vmatprep.subr.bf16.mxu1 %v1425_v38  ;;  %v1461_v30 = vpack.c.bf16 %v894_v28, %v893_v27  ;;  %v880_v38 = vld [vmem:[%s2164_s5 + $0x78] sm:$0xff] }
  0x6c   : > { %545 = vmatprep.mubr.f32.mxu0 %v1655_v0 }
  0x6e   : > { %1428 = vmatpush1.bf16.msra.mxu1 %v1427_v43  ;;  %v342_v43 = vld [vmem:[%s2161_s2] sm:$0x3] }
  0x6f   : > { %1278 = vmatmul.mubr.msk.f32.gmra.mrb[26].mxu0 %vm354_vm0, %v335_v37  ;;  %1430 = vmatprep.subr.bf16.mxu1 %v1429_v45  ;;  %v879_v37 = vld [vmem:[%s2164_s5 + $0x70] sm:$0xff]  ;;  %v1958_v45 = vrot.slane %v342_v43, %v346_v42 }
  0x70   : > { %551 = vmatprep.mubr.f32.mxu0 %v1655_v0  ;;  %v1467_v39 = vpack.c.bf16 %v880_v38, %v879_v37 }
  0x72   : > { %1432 = vmatpush1.bf16.msra.mxu1 %v1431_v49 }
  0x73   : > { %1279 = vmatmul.mubr.msk.f32.gmra.mrb[28].mxu0 %vm354_vm0, %v336_v44  ;;  %1434 = vmatprep.subr.bf16.mxu1 %v1433_v52  ;;  %v350_v44 = vsub.s32 1, %v1949_v41 }
  0x74   : > { %557 = vmatprep.mubr.f32.mxu0 %v1655_v0  ;;  %v881_v0 = vld [vmem:[%s2164_s5 + $0x80] sm:$0xff] }
  0x75   : > { %v1437_v58 = vpack.c.bf16 %v882_v56, %v881_v0 }
  0x76   : > { %1436 = vmatpush1.bf16.msra.mxu1 %v1435_v55 }
  0x77   : > { %1280 = vmatmul.mubr.msk.f32.gmra.mrb[30].mxu0 %vm354_vm0, %v337_v46  ;;  %1438 = vmatprep.subr.bf16.mxu0 %v1437_v58  ;;  %v1962_v46 = vrot.slane %v342_v43, %v350_v44 }
  0x78   : > { %1440 = vmatpush3.bf16.msra.mxu0 %v1439_v62 }
  0x79   : > { %1442 = vmatprep.subr.bf16.mxu0 %v1441_v63 }
  0x7c   : > { %1444 = vmatpush3.bf16.msra.mxu0 %v1443_v5 }
  0x7d   : > { %1446 = vmatprep.subr.bf16.mxu0 %v1445_v6 }
  0x80   : > { %1448 = vmatpush3.bf16.msra.mxu0 %v1447_v11 }
  0x81   : > { %1450 = vmatprep.subr.bf16.mxu0 %v1449_v12 }
  0x84   : > { %1452 = vmatpush3.bf16.msra.mxu0 %v1451_v17 }
  0x85   : > { %1454 = vmatprep.subr.bf16.mxu0 %v1453_v18 }
  0x88   : > { %1456 = vmatpush3.bf16.msra.mxu0 %v1455_v23 }
  0x89   : > { %1458 = vmatprep.subr.bf16.mxu0 %v1457_v24 }
  0x8c   : > { %1460 = vmatpush3.bf16.msra.mxu0 %v1459_v29 }
  0x8d   : > { %1462 = vmatprep.subr.bf16.mxu0 %v1461_v30 }
  0x90   : > { %1464 = vmatpush3.bf16.msra.mxu0 %v1463_v35 }
  0x91   : > { %1466 = vmatprep.subr.bf16.mxu0 %v1465_v36 }
  0x94   : > { %1468 = vmatpush3.bf16.msra.mxu0 %v1467_v39 }
 0x10e   : > { %v469_v47 = vpop.f32.mrb[0].mxu0 }
 0x10f   : > { %v470_v48 = vadd.f32 %v469_v47, %v1958_v45  ;;  %v471_v49 = vpop.f32.mrb[1].mxu0 }
 0x110   : > { %v472_v50 = vadd.f32 %v471_v49, %v1962_v46 }
 0x111   : > { %v564_v53 = vmax.f32 %v470_v48, 0.0 }
 0x112   : > { %v475_v51 = vpop.f32.mrb[2].mxu0  ;;  %v565_v52 = vmax.f32 %v472_v50, 0.0 }
 0x113   : > { %v476_v54 = vadd.f32 %v475_v51, %v1958_v45  ;;  %v477_v55 = vpop.f32.mrb[3].mxu0 }
 0x114   : > { %v478_v0 = vadd.f32 %v477_v55, %v1962_v46  ;;  %736 = vmatprep.mubr.f32.mxu1 %v565_v52 }
 0x115   : > { %737 = vmatmul.mubr.f32.vlgmr.msra.gmra.mrb[0].mxu1 %v564_v53  ;;  %v566_v58 = vmax.f32 %v476_v54, 0.0 }
 0x116   : > { %v567_v56 = vmax.f32 %v478_v0, 0.0  ;;  %v481_v57 = vpop.f32.mrb[4].mxu0 }
 0x117   : > { %v482_v59 = vadd.f32 %v481_v57, %v1958_v45  ;;  %v483_v60 = vpop.f32.mrb[5].mxu0 }
 0x118   : > { %v484_v61 = vadd.f32 %v483_v60, %v1962_v46  ;;  %742 = vmatprep.mubr.f32.mxu1 %v567_v56 }
 0x119   : > { %743 = vmatmul.mubr.f32.gmra.mrb[2].mxu1 %v566_v58  ;;  %v568_v1 = vmax.f32 %v482_v59, 0.0 }
 0x11a   : > { %v569_v62 = vmax.f32 %v484_v61, 0.0  ;;  %v487_v63 = vpop.f32.mrb[6].mxu0 }
 0x11b   : > { %v488_v2 = vadd.f32 %v487_v63, %v1958_v45  ;;  %v489_v3 = vpop.f32.mrb[7].mxu0 }
 0x11c   : > { %v490_v4 = vadd.f32 %v489_v3, %v1962_v46  ;;  %748 = vmatprep.mubr.f32.mxu1 %v569_v62 }
 0x11d   : > { %749 = vmatmul.mubr.f32.gmra.mrb[4].mxu1 %v568_v1  ;;  %v570_v7 = vmax.f32 %v488_v2, 0.0 }
 0x11e   : > { %v571_v5 = vmax.f32 %v490_v4, 0.0  ;;  %v493_v6 = vpop.f32.mrb[8].mxu0 }
 0x11f   : > { %v494_v8 = vadd.f32 %v493_v6, %v1958_v45  ;;  %v495_v9 = vpop.f32.mrb[9].mxu0 }
 0x120   : > { %v496_v10 = vadd.f32 %v495_v9, %v1962_v46  ;;  %754 = vmatprep.mubr.f32.mxu1 %v571_v5 }
 0x121   : > { %755 = vmatmul.mubr.f32.gmra.mrb[6].mxu1 %v570_v7  ;;  %v572_v13 = vmax.f32 %v494_v8, 0.0 }
 0x122   : > { %v573_v11 = vmax.f32 %v496_v10, 0.0  ;;  %v499_v12 = vpop.f32.mrb[10].mxu0 }
 0x123   : > { %v500_v14 = vadd.f32 %v499_v12, %v1958_v45  ;;  %v501_v15 = vpop.f32.mrb[11].mxu0 }
 0x124   : > { %v502_v16 = vadd.f32 %v501_v15, %v1962_v46  ;;  %760 = vmatprep.mubr.f32.mxu1 %v573_v11 }
 0x125   : > { %761 = vmatmul.mubr.f32.gmra.mrb[8].mxu1 %v572_v13  ;;  %v574_v19 = vmax.f32 %v500_v14, 0.0 }
 0x126   : > { %v575_v17 = vmax.f32 %v502_v16, 0.0  ;;  %v505_v18 = vpop.f32.mrb[12].mxu0 }
 0x127   : > { %v506_v20 = vadd.f32 %v505_v18, %v1958_v45  ;;  %v507_v21 = vpop.f32.mrb[13].mxu0 }
 0x128   : > { %v508_v22 = vadd.f32 %v507_v21, %v1962_v46  ;;  %766 = vmatprep.mubr.f32.mxu1 %v575_v17 }
 0x129   : > { %767 = vmatmul.mubr.f32.gmra.mrb[10].mxu1 %v574_v19  ;;  %v576_v25 = vmax.f32 %v506_v20, 0.0  ;;  %v660_v20 = vld [vmem:[%s2163_s4] sm:$0x3] }
 0x12a   : > { %v577_v23 = vmax.f32 %v508_v22, 0.0  ;;  %v511_v24 = vpop.f32.mrb[14].mxu0  ;;  %v2001_v21 = vrot.slane %v660_v20, %v346_v42 }
 0x12b   : > { %v512_v26 = vadd.f32 %v511_v24, %v1958_v45  ;;  %v513_v27 = vpop.f32.mrb[15].mxu0 }
 0x12c   : > { %v514_v28 = vadd.f32 %v513_v27, %v1962_v46  ;;  %772 = vmatprep.mubr.f32.mxu1 %v577_v23 }
 0x12d   : > { %773 = vmatmul.mubr.f32.gmra.mrb[12].mxu1 %v576_v25  ;;  %v578_v31 = vmax.f32 %v512_v26, 0.0 }
 0x12e   : > { %v579_v29 = vmax.f32 %v514_v28, 0.0  ;;  %v517_v30 = vpop.f32.mrb[16].mxu0 }
 0x12f   : > { %v518_v32 = vadd.f32 %v517_v30, %v1958_v45  ;;  %v519_v33 = vpop.f32.mrb[17].mxu0 }
 0x130   : > { %v520_v34 = vadd.f32 %v519_v33, %v1962_v46  ;;  %778 = vmatprep.mubr.f32.mxu1 %v579_v29 }
 0x131   : > { %779 = vmatmul.mubr.f32.gmra.mrb[14].mxu1 %v578_v31  ;;  %v580_v37 = vmax.f32 %v518_v32, 0.0 }
 0x132   : > { %v581_v35 = vmax.f32 %v520_v34, 0.0  ;;  %v523_v36 = vpop.f32.mrb[18].mxu0 }
 0x133   : > { %v524_v38 = vadd.f32 %v523_v36, %v1958_v45  ;;  %v525_v39 = vpop.f32.mrb[19].mxu0 }
 0x134   : > { %v526_v40 = vadd.f32 %v525_v39, %v1962_v46  ;;  %784 = vmatprep.mubr.f32.mxu1 %v581_v35 }
 0x135   : > { %785 = vmatmul.mubr.f32.gmra.mrb[16].mxu1 %v580_v37  ;;  %v582_v48 = vmax.f32 %v524_v38, 0.0 }
 0x136   : > { %v583_v43 = vmax.f32 %v526_v40, 0.0  ;;  %v529_v47 = vpop.f32.mrb[20].mxu0 }
 0x137   : > { %v530_v49 = vadd.f32 %v529_v47, %v1958_v45  ;;  %v531_v50 = vpop.f32.mrb[21].mxu0 }
 0x138   : > { %v532_v51 = vadd.f32 %v531_v50, %v1962_v46  ;;  %790 = vmatprep.mubr.f32.mxu1 %v583_v43 }
 0x139   : > { %791 = vmatmul.mubr.f32.gmra.mrb[18].mxu1 %v582_v48  ;;  %v584_v54 = vmax.f32 %v530_v49, 0.0 }
 0x13a   : > { %v585_v52 = vmax.f32 %v532_v51, 0.0  ;;  %v535_v53 = vpop.f32.mrb[22].mxu0 }
 0x13b   : > { %v536_v55 = vadd.f32 %v535_v53, %v1958_v45  ;;  %v537_v0 = vpop.f32.mrb[23].mxu0 }
 0x13c   : > { %v538_v56 = vadd.f32 %v537_v0, %v1962_v46  ;;  %796 = vmatprep.mubr.f32.mxu1 %v585_v52 }
 0x13d   : > { %797 = vmatmul.mubr.f32.gmra.mrb[20].mxu1 %v584_v54  ;;  %v586_v59 = vmax.f32 %v536_v55, 0.0 }
 0x13e   : > { %v587_v57 = vmax.f32 %v538_v56, 0.0  ;;  %v541_v58 = vpop.f32.mrb[24].mxu0 }
 0x13f   : > { %v542_v60 = vadd.f32 %v541_v58, %v1958_v45  ;;  %v543_v61 = vpop.f32.mrb[25].mxu0 }
 0x140   : > { %v544_v62 = vadd.f32 %v543_v61, %v1962_v46  ;;  %802 = vmatprep.mubr.f32.mxu1 %v587_v57 }
 0x141   : > { %803 = vmatmul.mubr.f32.gmra.mrb[22].mxu1 %v586_v59  ;;  %v588_v2 = vmax.f32 %v542_v60, 0.0 }
 0x142   : > { %v589_v63 = vmax.f32 %v544_v62, 0.0  ;;  %v547_v1 = vpop.f32.mrb[26].mxu0 }
 0x143   : > { %v548_v3 = vadd.f32 %v547_v1, %v1958_v45  ;;  %v549_v4 = vpop.f32.mrb[27].mxu0 }
 0x144   : > { %v550_v5 = vadd.f32 %v549_v4, %v1962_v46  ;;  %808 = vmatprep.mubr.f32.mxu1 %v589_v63 }
 0x145   : > { %809 = vmatmul.mubr.f32.gmra.mrb[24].mxu1 %v588_v2  ;;  %v590_v8 = vmax.f32 %v548_v3, 0.0 }
 0x146   : > { %v591_v6 = vmax.f32 %v550_v5, 0.0  ;;  %v553_v7 = vpop.f32.mrb[28].mxu0 }
 0x147   : > { %v554_v9 = vadd.f32 %v553_v7, %v1958_v45  ;;  %v555_v10 = vpop.f32.mrb[29].mxu0 }
 0x148   : > { %v556_v11 = vadd.f32 %v555_v10, %v1962_v46  ;;  %814 = vmatprep.mubr.f32.mxu1 %v591_v6 }
 0x149   : > { %815 = vmatmul.mubr.f32.gmra.mrb[26].mxu1 %v590_v8  ;;  %v592_v14 = vmax.f32 %v554_v9, 0.0 }
 0x14a   : > { %v593_v12 = vmax.f32 %v556_v11, 0.0  ;;  %v559_v13 = vpop.f32.mrb[30].mxu0 }
 0x14b   : > { %v560_v15 = vadd.f32 %v559_v13, %v1958_v45  ;;  %v561_v16 = vpop.f32.mrb[31].mxu0  ;;  %v2005_v45 = vrot.slane %v660_v20, %v350_v44 }
 0x14c   : > { %v562_v17 = vadd.f32 %v561_v16, %v1962_v46  ;;  %820 = vmatprep.mubr.f32.mxu1 %v593_v12 }
 0x14d   : > { %821 = vmatmul.mubr.f32.gmra.mrb[28].mxu1 %v592_v14  ;;  %v594_v19 = vmax.f32 %v560_v15, 0.0 }
 0x14e   : > { %v595_v18 = vmax.f32 %v562_v17, 0.0 }
 0x150   : > { %826 = vmatprep.mubr.f32.mxu1 %v595_v18 }
 0x151   : > { %827 = vmatmul.mubr.f32.gmra.mrb[30].mxu1 %v594_v19 }
 0x1e8   : > { %v738_v22 = vpop.f32.mrb[0].mxu1 }
 0x1e9   : > { %v739_v46 = vadd.f32 %v738_v22, %v2001_v21  ;;  %v740_v23 = vpop.f32.mrb[1].mxu1 }
 0x1ea   : > { %v741_v24 = vadd.f32 %v740_v23, %v2005_v45 }
 0x1eb   : > { %v833_v27 = vmax.f32 %v739_v46, 0.0 }
 0x1ec   : > { %v834_v25 = vmax.f32 %v741_v24, 0.0  ;;  %v744_v26 = vpop.f32.mrb[2].mxu1 }
 0x1ed   : > { %v745_v28 = vadd.f32 %v744_v26, %v2001_v21  ;;  %v746_v29 = vpop.f32.mrb[3].mxu1 }
 0x1ee   : > { %v747_v30 = vadd.f32 %v746_v29, %v2005_v45  ;;  %968 = vmatprep.mubr.f32.mxu0 %v834_v25 }
 0x1ef   : > { %969 = vmatmul.mubr.f32.vlgmr.msra.gmra.mrb[32].mxu0 %v833_v27  ;;  %v835_v44 = vmax.f32 %v745_v28, 0.0 }
 0x1f0   : > { %v836_v42 = vmax.f32 %v747_v30, 0.0  ;;  %v750_v41 = vpop.f32.mrb[4].mxu1 }
 0x1f1   : > { %v751_v31 = vadd.f32 %v750_v41, %v2001_v21  ;;  %v752_v32 = vpop.f32.mrb[5].mxu1 }
 0x1f2   : > { %v753_v33 = vadd.f32 %v752_v32, %v2005_v45  ;;  %973 = vmatprep.mubr.f32.mxu0 %v836_v42 }
 0x1f3   : > { %974 = vmatmul.mubr.f32.gmra.mrb[34].mxu0 %v835_v44  ;;  %v837_v36 = vmax.f32 %v751_v31, 0.0 }
 0x1f4   : > { %v838_v34 = vmax.f32 %v753_v33, 0.0  ;;  %v756_v35 = vpop.f32.mrb[6].mxu1 }
 0x1f5   : > { %v757_v37 = vadd.f32 %v756_v35, %v2001_v21  ;;  %v758_v38 = vpop.f32.mrb[7].mxu1 }
 0x1f6   : > { %v759_v39 = vadd.f32 %v758_v38, %v2005_v45  ;;  %978 = vmatprep.mubr.f32.mxu0 %v838_v34 }
 0x1f7   : > { %979 = vmatmul.mubr.f32.gmra.mrb[36].mxu0 %v837_v36  ;;  %v839_v47 = vmax.f32 %v757_v37, 0.0 }
 0x1f8   : > { %v840_v40 = vmax.f32 %v759_v39, 0.0  ;;  %v762_v43 = vpop.f32.mrb[8].mxu1 }
 0x1f9   : > { %v763_v48 = vadd.f32 %v762_v43, %v2001_v21  ;;  %v764_v49 = vpop.f32.mrb[9].mxu1 }
 0x1fa   : > { %v765_v50 = vadd.f32 %v764_v49, %v2005_v45  ;;  %983 = vmatprep.mubr.f32.mxu0 %v840_v40 }
 0x1fb   : > { %984 = vmatmul.mubr.f32.gmra.mrb[38].mxu0 %v839_v47  ;;  %v841_v53 = vmax.f32 %v763_v48, 0.0 }
 0x1fc   : > { %v842_v51 = vmax.f32 %v765_v50, 0.0  ;;  %v768_v52 = vpop.f32.mrb[10].mxu1 }
 0x1fd   : > { %v769_v54 = vadd.f32 %v768_v52, %v2001_v21  ;;  %v770_v55 = vpop.f32.mrb[11].mxu1 }
 0x1fe   : > { %v771_v0 = vadd.f32 %v770_v55, %v2005_v45  ;;  %988 = vmatprep.mubr.f32.mxu0 %v842_v51 }
 0x1ff   : > { %989 = vmatmul.mubr.f32.gmra.mrb[40].mxu0 %v841_v53  ;;  %v843_v58 = vmax.f32 %v769_v54, 0.0 }
 0x200   : > { %v844_v56 = vmax.f32 %v771_v0, 0.0  ;;  %v774_v57 = vpop.f32.mrb[12].mxu1 }
 0x201   : > { %v775_v59 = vadd.f32 %v774_v57, %v2001_v21  ;;  %v776_v60 = vpop.f32.mrb[13].mxu1  ;;  %v2042_v57 = vld [vmem:[%s2165_s6] ss:$0 sm:$0xff] }
 0x202   : > { %v777_v61 = vadd.f32 %v776_v60, %v2005_v45  ;;  %993 = vmatprep.mubr.f32.mxu0 %v844_v56 }
 0x203   : > { %994 = vmatmul.mubr.f32.gmra.mrb[42].mxu0 %v843_v58  ;;  %v845_v1 = vmax.f32 %v775_v59, 0.0 }
 0x204   : > { %v846_v62 = vmax.f32 %v777_v61, 0.0  ;;  %v780_v63 = vpop.f32.mrb[14].mxu1 }
 0x205   : > { %v781_v2 = vadd.f32 %v780_v63, %v2001_v21  ;;  %v782_v3 = vpop.f32.mrb[15].mxu1 }
 0x206   : > { %v783_v4 = vadd.f32 %v782_v3, %v2005_v45  ;;  %998 = vmatprep.mubr.f32.mxu0 %v846_v62 }
 0x207   : > { %999 = vmatmul.mubr.f32.gmra.mrb[44].mxu0 %v845_v1  ;;  %v847_v7 = vmax.f32 %v781_v2, 0.0 }
 0x208   : > { %v848_v5 = vmax.f32 %v783_v4, 0.0  ;;  %v786_v6 = vpop.f32.mrb[16].mxu1 }
 0x209   : > { %v787_v8 = vadd.f32 %v786_v6, %v2001_v21  ;;  %v788_v9 = vpop.f32.mrb[17].mxu1 }
 0x20a   : > { %v789_v10 = vadd.f32 %v788_v9, %v2005_v45  ;;  %1003 = vmatprep.mubr.f32.mxu0 %v848_v5 }
 0x20b   : > { %1004 = vmatmul.mubr.f32.gmra.mrb[46].mxu0 %v847_v7  ;;  %v849_v13 = vmax.f32 %v787_v8, 0.0 }
 0x20c   : > { %v850_v11 = vmax.f32 %v789_v10, 0.0  ;;  %v792_v12 = vpop.f32.mrb[18].mxu1 }
 0x20d   : > { %v793_v14 = vadd.f32 %v792_v12, %v2001_v21  ;;  %v794_v15 = vpop.f32.mrb[19].mxu1 }
 0x20e   : > { %v795_v16 = vadd.f32 %v794_v15, %v2005_v45  ;;  %1008 = vmatprep.mubr.f32.mxu0 %v850_v11  ;;  %v2052_v15 = vld [vmem:[%s2166_s7] ss:$0 sm:$0xff] }
 0x20f   : > { %1009 = vmatmul.mubr.f32.gmra.mrb[48].mxu0 %v849_v13  ;;  %v851_v19 = vmax.f32 %v793_v14, 0.0 }
 0x210   : > { %v852_v17 = vmax.f32 %v795_v16, 0.0  ;;  %v798_v18 = vpop.f32.mrb[20].mxu1 }
 0x211   : > { %v799_v20 = vadd.f32 %v798_v18, %v2001_v21  ;;  %v800_v22 = vpop.f32.mrb[21].mxu1 }
 0x212   : > { %v801_v46 = vadd.f32 %v800_v22, %v2005_v45  ;;  %1013 = vmatprep.mubr.f32.mxu0 %v852_v17 }
 0x213   : > { %1014 = vmatmul.mubr.f32.gmra.mrb[50].mxu0 %v851_v19  ;;  %v853_v25 = vmax.f32 %v799_v20, 0.0 }
 0x214   : > { %v854_v23 = vmax.f32 %v801_v46, 0.0  ;;  %v804_v24 = vpop.f32.mrb[22].mxu1 }
 0x215   : > { %v805_v26 = vadd.f32 %v804_v24, %v2001_v21  ;;  %v806_v27 = vpop.f32.mrb[23].mxu1 }
 0x216   : > { %v807_v28 = vadd.f32 %v806_v27, %v2005_v45  ;;  %1018 = vmatprep.mubr.f32.mxu0 %v854_v23 }
 0x217   : > { %1019 = vmatmul.mubr.f32.gmra.mrb[52].mxu0 %v853_v25  ;;  %v855_v42 = vmax.f32 %v805_v26, 0.0 }
 0x218   : > { %v856_v29 = vmax.f32 %v807_v28, 0.0  ;;  %v810_v30 = vpop.f32.mrb[24].mxu1 }
 0x219   : > { %v811_v41 = vadd.f32 %v810_v30, %v2001_v21  ;;  %v812_v44 = vpop.f32.mrb[25].mxu1 }
 0x21a   : > { %v813_v31 = vadd.f32 %v812_v44, %v2005_v45  ;;  %1023 = vmatprep.mubr.f32.mxu0 %v856_v29 }
 0x21b   : > { %1024 = vmatmul.mubr.f32.gmra.mrb[54].mxu0 %v855_v42  ;;  %v857_v34 = vmax.f32 %v811_v41, 0.0 }
 0x21c   : > { %v858_v32 = vmax.f32 %v813_v31, 0.0  ;;  %v816_v33 = vpop.f32.mrb[26].mxu1 }
 0x21d   : > { %v817_v35 = vadd.f32 %v816_v33, %v2001_v21  ;;  %v818_v36 = vpop.f32.mrb[27].mxu1 }
 0x21e   : > { %v819_v37 = vadd.f32 %v818_v36, %v2005_v45  ;;  %1028 = vmatprep.mubr.f32.mxu0 %v858_v32 }
 0x21f   : > { %1029 = vmatmul.mubr.f32.gmra.mrb[56].mxu0 %v857_v34  ;;  %v859_v40 = vmax.f32 %v817_v35, 0.0 }
 0x220   : > { %v860_v38 = vmax.f32 %v819_v37, 0.0  ;;  %v822_v39 = vpop.f32.mrb[28].mxu1 }
 0x221   : > { %v823_v43 = vadd.f32 %v822_v39, %v2001_v21  ;;  %v824_v47 = vpop.f32.mrb[29].mxu1 }
 0x222   : > { %v825_v48 = vadd.f32 %v824_v47, %v2005_v45  ;;  %1033 = vmatprep.mubr.f32.mxu0 %v860_v38 }
 0x223   : > { %1034 = vmatmul.mubr.f32.gmra.mrb[58].mxu0 %v859_v40  ;;  %v861_v51 = vmax.f32 %v823_v43, 0.0 }
 0x224   : > { %v862_v49 = vmax.f32 %v825_v48, 0.0  ;;  %v828_v50 = vpop.f32.mrb[30].mxu1 }
 0x225   : > { %v829_v52 = vadd.f32 %v828_v50, %v2001_v21  ;;  %v830_v53 = vpop.f32.mrb[31].mxu1 }
 0x226   : > { %v831_v54 = vadd.f32 %v830_v53, %v2005_v45  ;;  %1038 = vmatprep.mubr.f32.mxu0 %v862_v49 }
 0x227   : > { %1039 = vmatmul.mubr.f32.gmra.mrb[60].mxu0 %v861_v51  ;;  %v863_v0 = vmax.f32 %v829_v52, 0.0 }
 0x228   : > { %v864_v55 = vmax.f32 %v831_v54, 0.0 }
 0x22a   : > { %1043 = vmatprep.mubr.f32.mxu0 %v864_v55 }
 0x22b   : > { %1044 = vmatmul.mubr.f32.gmra.mrb[62].mxu0 %v863_v0 }
 0x2c2   : > { %v1321_v56 = vpop.f32.mrb[32].mxu0 }
 0x2c3   : > { %v1322_v58 = vpop.f32.mrb[33].mxu0 }
 0x2c4   : > { %v1323_v59 = vadd.f32 %v1322_v58, %v1321_v56 }
 0x2c6   : > { %v971_v60 = vadd.f32 %v1323_v59, %v2042_v57  ;;  %v1324_v21 = vpop.f32.mrb[34].mxu0 }
 0x2c7   : > { %v1325_v61 = vpop.f32.mrb[35].mxu0 }
 0x2c8   : > { %1524 = vtanh.f32 %v971_v60  ;;  %v1326_v45 = vadd.f32 %v1325_v61, %v1324_v21 }
 0x2ca   : > { %v976_v62 = vadd.f32 %v1326_v45, %v2042_v57  ;;  %v1327_v63 = vpop.f32.mrb[36].mxu0 }
 0x2cb   : > { %v1328_v1 = vpop.f32.mrb[37].mxu0 }
 0x2cc   : > { %1526 = vtanh.f32 %v976_v62  ;;  %v1329_v2 = vadd.f32 %v1328_v1, %v1327_v63 }
 0x2ce   : > { %v981_v3 = vadd.f32 %v1329_v2, %v2042_v57  ;;  %v1330_v4 = vpop.f32.mrb[38].mxu0 }
 0x2cf   : > { %v1331_v5 = vpop.f32.mrb[39].mxu0 }
 0x2d0   : > { %1528 = vtanh.f32 %v981_v3  ;;  %v1332_v6 = vadd.f32 %v1331_v5, %v1330_v4 }
 0x2d2   : > { %v1525_v7 = vpop.eup %1524  ;;  %v986_v8 = vadd.f32 %v1332_v6, %v2042_v57  ;;  %v1333_v9 = vpop.f32.mrb[40].mxu0 }
 0x2d3   : > { %v1065_v10 = vmul.f32 3.5, %v1525_v7  ;;  %v1334_v11 = vpop.f32.mrb[41].mxu0 }
 0x2d4   : > { %1530 = vtanh.f32 %v986_v8  ;;  %v1335_v12 = vadd.f32 %v1334_v11, %v1333_v9 }
 0x2d5   : > { %v1081_v13 = vadd.f32 -1.5, %v1065_v10 }
 0x2d6   : > { %v1527_v14 = vpop.eup %1526  ;;  %v991_v16 = vadd.f32 %v1335_v12, %v2042_v57  ;;  %v1336_v17 = vpop.f32.mrb[42].mxu0 }
 0x2d7   : > { %v1098_v18 = vsub.f32 %v1081_v13, %v971_v60  ;;  %v1066_v19 = vmul.f32 3.5, %v1527_v14  ;;  %v1337_v20 = vpop.f32.mrb[43].mxu0 }
 0x2d8   : > { %1532 = vtanh.f32 %v991_v16  ;;  %v1338_v22 = vadd.f32 %v1337_v20, %v1336_v17 }
 0x2d9   : > { %v1120_v46 = vmul.f32 %v2052_v15, %v1098_v18  ;;  %v1082_v23 = vadd.f32 -1.5, %v1066_v19 }
 0x2da   : > { %v1529_v24 = vpop.eup %1528  ;;  %v2059_v25 = vadd.f32 %v1338_v22, %v2042_v57  ;;  %v1339_v26 = vpop.f32.mrb[44].mxu0 }
 0x2db   : > { %v1136_v27 = vadd.f32 %v1120_v46, %v971_v60  ;;  %v1099_v28 = vsub.f32 %v1082_v23, %v976_v62  ;;  %v1067_v29 = vmul.f32 3.5, %v1529_v24  ;;  %v1340_v30 = vpop.f32.mrb[45].mxu0 }
 0x2dc   : > { %1534 = vtanh.f32 %v2059_v25  ;;  %v1341_v42 = vadd.f32 %v1340_v30, %v1339_v26 }
 0x2dd   : > { %1152 = vst [vmem:[%s2062_s13] sm:$0xff] %v1136_v27  ;;  %v1121_v41 = vmul.f32 %v2052_v15, %v1099_v28  ;;  %v1083_v44 = vadd.f32 -1.5, %v1067_v29 }
 0x2de   : > { %v1531_v31 = vpop.eup %1530  ;;  %v1001_v32 = vadd.f32 %v1341_v42, %v2042_v57  ;;  %v1342_v33 = vpop.f32.mrb[46].mxu0 }
 0x2df   : > { %v1137_v34 = vadd.f32 %v1121_v41, %v976_v62  ;;  %v1100_v35 = vsub.f32 %v1083_v44, %v981_v3  ;;  %v1068_v36 = vmul.f32 3.5, %v1531_v31  ;;  %v1343_v37 = vpop.f32.mrb[47].mxu0 }
 0x2e0   : > { %1536 = vtanh.f32 %v1001_v32  ;;  %v1344_v38 = vadd.f32 %v1343_v37, %v1342_v33 }
 0x2e1   : > { %1153 = vst [vmem:[%s2062_s13 + $0x8] sm:$0xff] %v1137_v34  ;;  %v1122_v39 = vmul.f32 %v2052_v15, %v1100_v35  ;;  %v1084_v40 = vadd.f32 -1.5, %v1068_v36 }
 0x2e2   : > { %v1533_v43 = vpop.eup %1532  ;;  %v1006_v47 = vadd.f32 %v1344_v38, %v2042_v57  ;;  %v1345_v48 = vpop.f32.mrb[48].mxu0 }
 0x2e3   : > { %v1138_v49 = vadd.f32 %v1122_v39, %v981_v3  ;;  %v1101_v50 = vsub.f32 %v1084_v40, %v986_v8  ;;  %v1069_v51 = vmul.f32 3.5, %v1533_v43  ;;  %v1346_v52 = vpop.f32.mrb[49].mxu0 }
 0x2e4   : > { %1538 = vtanh.f32 %v1006_v47  ;;  %v1347_v53 = vadd.f32 %v1346_v52, %v1345_v48 }
 0x2e5   : > { %1154 = vst [vmem:[%s2062_s13 + $0x10] sm:$0xff] %v1138_v49  ;;  %v1123_v54 = vmul.f32 %v2052_v15, %v1101_v50  ;;  %v1085_v55 = vadd.f32 -1.5, %v1069_v51 }
 0x2e6   : > { %v1535_v0 = vpop.eup %1534  ;;  %v1011_v56 = vadd.f32 %v1347_v53, %v2042_v57  ;;  %v1348_v58 = vpop.f32.mrb[50].mxu0 }
 0x2e7   : > { %v1139_v59 = vadd.f32 %v1123_v54, %v986_v8  ;;  %v1102_v60 = vsub.f32 %v1085_v55, %v991_v16  ;;  %v1070_v21 = vmul.f32 3.5, %v1535_v0  ;;  %v1349_v61 = vpop.f32.mrb[51].mxu0 }
 0x2e8   : > { %1540 = vtanh.f32 %v1011_v56  ;;  %v1350_v45 = vadd.f32 %v1349_v61, %v1348_v58 }
 0x2e9   : > { %1155 = vst [vmem:[%s2062_s13 + $0x18] sm:$0xff] %v1139_v59  ;;  %v1124_v62 = vmul.f32 %v2052_v15, %v1102_v60  ;;  %v1086_v63 = vadd.f32 -1.5, %v1070_v21 }
 0x2ea   : > { %v1537_v1 = vpop.eup %1536  ;;  %v1016_v2 = vadd.f32 %v1350_v45, %v2042_v57  ;;  %v1351_v3 = vpop.f32.mrb[52].mxu0 }
 0x2eb   : > { %v1140_v4 = vadd.f32 %v1124_v62, %v991_v16  ;;  %v1103_v5 = vsub.f32 %v1086_v63, %v2059_v25  ;;  %v1071_v6 = vmul.f32 3.5, %v1537_v1  ;;  %v1352_v7 = vpop.f32.mrb[53].mxu0 }
 0x2ec   : > { %1542 = vtanh.f32 %v1016_v2  ;;  %v1353_v8 = vadd.f32 %v1352_v7, %v1351_v3 }
 0x2ed   : > { %1156 = vst [vmem:[%s2062_s13 + $0x20] sm:$0xff] %v1140_v4  ;;  %v1125_v9 = vmul.f32 %v2052_v15, %v1103_v5  ;;  %v1087_v10 = vadd.f32 -1.5, %v1071_v6 }
 0x2ee   : > { %v1539_v11 = vpop.eup %1538  ;;  %v1021_v12 = vadd.f32 %v1353_v8, %v2042_v57  ;;  %v1354_v13 = vpop.f32.mrb[54].mxu0 }
 0x2ef   : > { %v1141_v14 = vadd.f32 %v1125_v9, %v2059_v25  ;;  %v1104_v17 = vsub.f32 %v1087_v10, %v1001_v32  ;;  %v1072_v18 = vmul.f32 3.5, %v1539_v11  ;;  %v1355_v16 = vpop.f32.mrb[55].mxu0 }
 0x2f0   : > { %1544 = vtanh.f32 %v1021_v12  ;;  %v1356_v19 = vadd.f32 %v1355_v16, %v1354_v13 }
 0x2f1   : > { %1157 = vst [vmem:[%s2062_s13 + $0x28] sm:$0xff] %v1141_v14  ;;  %v1126_v20 = vmul.f32 %v2052_v15, %v1104_v17  ;;  %v1088_v22 = vadd.f32 -1.5, %v1072_v18 }
 0x2f2   : > { %v1541_v46 = vpop.eup %1540  ;;  %v1026_v23 = vadd.f32 %v1356_v19, %v2042_v57  ;;  %v1357_v24 = vpop.f32.mrb[56].mxu0 }
 0x2f3   : > { %v1142_v26 = vadd.f32 %v1126_v20, %v1001_v32  ;;  %v1105_v27 = vsub.f32 %v1088_v22, %v1006_v47  ;;  %v1073_v28 = vmul.f32 3.5, %v1541_v46  ;;  %v1358_v29 = vpop.f32.mrb[57].mxu0 }
 0x2f4   : > { %1546 = vtanh.f32 %v1026_v23  ;;  %v1359_v25 = vadd.f32 %v1358_v29, %v1357_v24 }
 0x2f5   : > { %1158 = vst [vmem:[%s2062_s13 + $0x30] sm:$0xff] %v1142_v26  ;;  %v1127_v30 = vmul.f32 %v2052_v15, %v1105_v27  ;;  %v1089_v42 = vadd.f32 -1.5, %v1073_v28 }
 0x2f6   : > { %v1543_v41 = vpop.eup %1542  ;;  %v1031_v44 = vadd.f32 %v1359_v25, %v2042_v57  ;;  %v1360_v31 = vpop.f32.mrb[58].mxu0 }
 0x2f7   : > { %v1143_v33 = vadd.f32 %v1127_v30, %v1006_v47  ;;  %v1106_v34 = vsub.f32 %v1089_v42, %v1011_v56  ;;  %v1074_v35 = vmul.f32 3.5, %v1543_v41  ;;  %v1361_v36 = vpop.f32.mrb[59].mxu0 }
 0x2f8   : > { %1548 = vtanh.f32 %v1031_v44  ;;  %v1362_v32 = vadd.f32 %v1361_v36, %v1360_v31 }
 0x2f9   : > { %1159 = vst [vmem:[%s2062_s13 + $0x38] sm:$0xff] %v1143_v33  ;;  %v1128_v37 = vmul.f32 %v2052_v15, %v1106_v34  ;;  %v1090_v38 = vadd.f32 -1.5, %v1074_v35 }
 0x2fa   : > { %v1545_v39 = vpop.eup %1544  ;;  %v1036_v40 = vadd.f32 %v1362_v32, %v2042_v57  ;;  %v1363_v43 = vpop.f32.mrb[60].mxu0 }
 0x2fb   : > { %v1144_v48 = vadd.f32 %v1128_v37, %v1011_v56  ;;  %v1107_v49 = vsub.f32 %v1090_v38, %v1016_v2  ;;  %v1075_v50 = vmul.f32 3.5, %v1545_v39  ;;  %v1364_v51 = vpop.f32.mrb[61].mxu0 }
 0x2fc   : > { %1550 = vtanh.f32 %v1036_v40  ;;  %v1365_v47 = vadd.f32 %v1364_v51, %v1363_v43 }
 0x2fd   : > { %1160 = vst [vmem:[%s2062_s13 + $0x40] sm:$0xff] %v1144_v48  ;;  %v1129_v52 = vmul.f32 %v2052_v15, %v1107_v49  ;;  %v1091_v53 = vadd.f32 -1.5, %v1075_v50 }
 0x2fe   : > { %v1547_v54 = vpop.eup %1546  ;;  %v1041_v55 = vadd.f32 %v1365_v47, %v2042_v57  ;;  %v1366_v0 = vpop.f32.mrb[62].mxu0 }
 0x2ff   : > { %v1145_v58 = vadd.f32 %v1129_v52, %v1016_v2  ;;  %v1108_v59 = vsub.f32 %v1091_v53, %v1021_v12  ;;  %v1076_v60 = vmul.f32 3.5, %v1547_v54  ;;  %v1367_v21 = vpop.f32.mrb[63].mxu0 }
 0x300   : > { %1552 = vtanh.f32 %v1041_v55  ;;  %v1368_v56 = vadd.f32 %v1367_v21, %v1366_v0 }
 0x301   : > { %1161 = vst [vmem:[%s2062_s13 + $0x48] sm:$0xff] %v1145_v58  ;;  %v1130_v61 = vmul.f32 %v2052_v15, %v1108_v59  ;;  %v1092_v45 = vadd.f32 -1.5, %v1076_v60 }
 0x302   : > { %v1549_v62 = vpop.eup %1548  ;;  %v1046_v63 = vadd.f32 %v1368_v56, %v2042_v57 }
 0x303   : > { %v1146_v1 = vadd.f32 %v1130_v61, %v1021_v12  ;;  %v1109_v3 = vsub.f32 %v1092_v45, %v1026_v23  ;;  %v1077_v4 = vmul.f32 3.5, %v1549_v62 }
 0x304   : > { %1554 = vtanh.f32 %v1046_v63 }
 0x305   : > { %1162 = vst [vmem:[%s2062_s13 + $0x50] sm:$0xff] %v1146_v1  ;;  %v1131_v2 = vmul.f32 %v2052_v15, %v1109_v3  ;;  %v1093_v5 = vadd.f32 -1.5, %v1077_v4 }
 0x306   : > { %v1551_v6 = vpop.eup %1550 }
 0x307   : > { %v1147_v7 = vadd.f32 %v1131_v2, %v1026_v23  ;;  %v1110_v8 = vsub.f32 %v1093_v5, %v1031_v44  ;;  %v1078_v9 = vmul.f32 3.5, %v1551_v6 }
 0x309   : > { %1163 = vst [vmem:[%s2062_s13 + $0x58] sm:$0xff] %v1147_v7  ;;  %v1132_v10 = vmul.f32 %v2052_v15, %v1110_v8  ;;  %v1094_v11 = vadd.f32 -1.5, %v1078_v9 }
 0x30a   : > { %v1553_v13 = vpop.eup %1552 }
 0x30b   : > { %v1148_v57 = vadd.f32 %v1132_v10, %v1031_v44  ;;  %v1111_v12 = vsub.f32 %v1094_v11, %v1036_v40  ;;  %v1079_v14 = vmul.f32 3.5, %v1553_v13 }
 0x30d   : > { %1164 = vst [vmem:[%s2062_s13 + $0x60] sm:$0xff] %v1148_v57  ;;  %v1133_v17 = vmul.f32 %v2052_v15, %v1111_v12  ;;  %v1095_v18 = vadd.f32 -1.5, %v1079_v14 }
 0x30e   : > { %v1555_v16 = vpop.eup %1554 }
 0x30f   : > { %v1149_v19 = vadd.f32 %v1133_v17, %v1036_v40  ;;  %v1112_v20 = vsub.f32 %v1095_v18, %v1041_v55  ;;  %v1080_v22 = vmul.f32 3.5, %v1555_v16 }
 0x311   : > { %1165 = vst [vmem:[%s2062_s13 + $0x68] sm:$0xff] %v1149_v19  ;;  %v1134_v46 = vmul.f32 %v2052_v15, %v1112_v20  ;;  %v1096_v23 = vadd.f32 -1.5, %v1080_v22 }
 0x313   : > { %v1150_v24 = vadd.f32 %v1134_v46, %v1041_v55  ;;  %v1113_v26 = vsub.f32 %v1096_v23, %v1046_v63 }
 0x315   : > { %1166 = vst [vmem:[%s2062_s13 + $0x70] sm:$0xff] %v1150_v24  ;;  %v1135_v27 = vmul.f32 %v2052_v15, %v1113_v26 }
 0x317   : > { %v1151_v28 = vadd.f32 %v1135_v27, %v1046_v63 }
 0x319   : > { %1167 = vst [vmem:[%s2062_s13 + $0x78] sm:$0xff] %v1151_v28 }
 0x31a   : > { %1597 = shalt.err (!%p1594_p7)
}
 0x31b   : > { %s1598_s19 = scalar_lea.hbm %s2111_s20, 2048  ;;  %s1602_s13 = scalar_lea.hbm %s2167_s8, 4096 }
 0x31c   : > { %p1599_p8 = scmp.ne.s32.totalorder %s2111_s20, %s1598_s19  ;;  %p1603_p1 = scmp.lt.u32.totalorder %s2111_s20, %s2167_s8 }
 0x31d   : > { %p1604_p0 = scmp.lt.u32.totalorder %s1602_s13, %s1598_s19  ;;  %p1606_p6 = scmp.lt.u32.totalorder %s1598_s19, %s2111_s20 }
 0x31e   : > { %p1600_p11 = pnand %p1599_p8, %p2178_p9 }
 0x31f   : > { %p1605_p5 = por %p1604_p0, %p1603_p1 }
 0x320   : > { %p1601_p13 = pneg %p1600_p11 }
 0x321   : > { %p1607_p10 = por %p1606_p6, %p1605_p5 }
 0x323   : > { %p1608_p12 = pnand %p1607_p10, %p1601_p13 }
 0x325   : > { %1611 = shalt.err (!%p1608_p12)
}
 0x326   : > { %s1657_s23 = smov 128   ;;  %s1658_s9 = smov 8  }
 0x327   : > { %1473 = dma.vmem_to_hbm [thread:$0]  (%p2178_p9), %s2113_s21, 2048, %s2111_s20, %s2118_s24, %s1657_s23, %s1657_s23, %s1658_s9  }
 0x328 PF: > { %p1485_p2 = scmp.ge.s32.totalorder %s1650_s30, 2  ;;  %s1197_s25 = sand.u32 1, %s1638_s27  }
 0x329   : > { %p2179_p3 = scmp.ne.s32.totalorder %s2172_s16, 0  ;;  %s1198_s17 = scalar_lea.sflag [#allocation4], %s1197_s25 }
 0x32b   : > { %p1480_p4 = pnand %p1485_p2, %p2179_p3 }
 0x32d   : > { %1633 = dma.done.wait (!%p1480_p4), %s1198_s17, 2048  }
 0x32e   : > { %1635 = vsyncadd (!%p1480_p4), %s1198_s17, 4294965248  ;;  %p19_p7 = scmp.ge.s32.totalorder %s1729_s11, 4   ;;  %s2180_s27 = smov %s1642_s28 }
 0x32f   : > { %s2181_s28 = smov %s1646_s29  ;;  %s2182_s29 = smov %s1740_s14 }
 0x330   : > { %s2183_s30 = smov %s1729_s11  ;;  %21 = sbr.rel (!%p19_p7) target bundleno = 4 (0x4), region = 92 }
 0x337   :  { %1203 = vsyncpa [#allocation3], 1 }
 0x338   :  { %1205 = vsyncpa [#allocation3 + $0x1], 1 }
 0x339   :  { %1206 = vsyncpa [#allocation4], 1 }
 0x33a   :  { %1208 = vsyncpa [#allocation4 + $0x1], 1 }

</bundles_post_ra>
